<compile_context>
chip_gen: v7x
topology: tpu7x:2x2x1
jax: 0.10.0
libtpu: 0.0.40
codegen_flags: <defaults>
</compile_context>

<pallas_src>
import jax
import jax.numpy as jnp
from jax.experimental import pallas as pl
from jax.experimental.pallas import tpu as pltpu


def _vmem_limit(estimate_bytes, floor=8 << 20, cap=48 << 20):
    # Explicit scoped-VMEM request sized to the chosen tiles (cap stays safe on
    # v7x's 64 MiB physical VMEM; floor covers tiny demo shapes).
    return int(max(floor, min(cap, estimate_bytes)))


# ------------------------------------------------------------------------------------
# Kernel 1: Linear projection + LayerNorm  (hidden_size -> output_hidden_size)
# ------------------------------------------------------------------------------------
def _proj_ln_kernel(x_ref, w_ref, b_ref, g_ref, beta_ref, o_ref):
    # x: (TM, H), w: (H, O), b/g/beta: (1, O), o: (TM, O)
    x = x_ref[...]
    y = jnp.dot(x, w_ref[...], preferred_element_type=jnp.float32) + b_ref[...]
    mean = jnp.mean(y, axis=-1, keepdims=True)
    var = jnp.mean(jnp.square(y - mean), axis=-1, keepdims=True)
    y = (y - mean) * jax.lax.rsqrt(var + 1e-5)
    o_ref[...] = (y * g_ref[...] + beta_ref[...]).astype(o_ref.dtype)


def proj_layer_norm(x, w, b, gamma, beta, *, max_row_tile=512):
    B, T, H = x.shape
    O = w.shape[1]
    BT = B * T
    x2 = x.reshape(BT, H)

    # Row tile: whole thing if small, otherwise a sublane-aligned tile so the
    # (BT, H) slab never has to fit VMEM in one block.
    if BT <= max_row_tile:
        tm = BT
    else:
        tm = max(8, max_row_tile - max_row_tile % 8)
    grid = (pl.cdiv(BT, tm),)

    isz = jnp.dtype(x.dtype).itemsize
    vmem_est = 3 * (2 * tm * H * isz + 2 * tm * O * 4) + 2 * (H * O + 3 * O) * isz
    cost = pl.CostEstimate(
        flops=int(2 * BT * H * O + 8 * BT * O),
        transcendentals=int(BT),
        bytes_accessed=int((BT * H + BT * O + H * O + 3 * O) * isz),
    )

    out = pl.pallas_call(
        _proj_ln_kernel,
        grid=grid,
        out_shape=jax.ShapeDtypeStruct((BT, O), x.dtype),
        in_specs=[
            pl.BlockSpec((tm, H), lambda i: (i, 0)),
            pl.BlockSpec((H, O), lambda i: (0, 0)),
            pl.BlockSpec((1, O), lambda i: (0, 0)),
            pl.BlockSpec((1, O), lambda i: (0, 0)),
            pl.BlockSpec((1, O), lambda i: (0, 0)),
        ],
        out_specs=pl.BlockSpec((tm, O), lambda i: (i, 0)),
        compiler_params=pltpu.CompilerParams(
            dimension_semantics=("parallel",),
            vmem_limit_bytes=_vmem_limit(vmem_est),
        ),
        cost_estimate=cost,
    )(x2, w, b.reshape(1, O), gamma.reshape(1, O), beta.reshape(1, O))
    return out.reshape(B, T, O)


# ------------------------------------------------------------------------------------
# Kernel 2: fused adapter conv stack  (num_adapter_layers x [Conv1d(C->2C) + GLU])
# channel-last formulation: conv == sum_k  x_shift_k @ W_k,  W_k: (C_in, C_out)
# ------------------------------------------------------------------------------------
def _make_conv_stack_kernel(t_sizes, K, stride, pad, n_layers, C):
    def kernel(x_ref, wv_ref, wg_ref, bv_ref, bg_ref, o_ref, buf_a, buf_b):
        # Zero the scratch so the `pad` rows at both ends of every layer's input
        # are valid zero padding (buffers shrink in the time dim per layer).
        buf_a[...] = jnp.zeros_like(buf_a)
        if n_layers > 1:
            buf_b[...] = jnp.zeros_like(buf_b)

        # Stage the (un-padded) input into the padded scratch buffer.
        buf_a[pad:pad + t_sizes[0], :] = x_ref[0].astype(buf_a.dtype)

        bufs = (buf_a, buf_b)
        for l in range(n_layers):
            t_out = t_sizes[l + 1]
            src = bufs[l % 2]

            acc_v = jnp.zeros((t_out, C), jnp.float32)
            acc_g = jnp.zeros((t_out, C), jnp.float32)
            # Conv1d as a sum of K strided-shifted (T_out, C) x (C, C) matmuls;
            # two independent accumulators for the GLU value and gate halves.
            for k in range(K):
                xk = src[pl.ds(k, t_out, stride=stride), :]
                acc_v += jnp.dot(xk, wv_ref[l, k], preferred_element_type=jnp.float32)
                acc_g += jnp.dot(xk, wg_ref[l, k], preferred_element_type=jnp.float32)

            glu = (acc_v + bv_ref[l]) * jax.nn.sigmoid(acc_g + bg_ref[l])

            if l == n_layers - 1:
                o_ref[0] = glu.astype(o_ref.dtype)
            else:
                dst = bufs[(l + 1) % 2]
                dst[pad:pad + t_out, :] = glu.astype(dst.dtype)

    return kernel


def adapter_conv_stack(x_btc, layers, *, stride, padding):
    """x_btc: (B, T, C) channel-last; layers: list of (w (2C, C, K), b (2C,))."""
    B, T0, C = x_btc.shape
    L = len(layers)
    K = layers[0][0].shape[2]

    t_sizes = [T0]
    for _ in range(L):
        t_sizes.append((t_sizes[-1] + 2 * padding - K) // stride + 1)
    t_final = t_sizes[-1]
    t_pad = T0 + 2 * padding

    # Split each conv weight (2C, C, K) into value/gate halves laid out as
    # (K, C_in, C_out) so every kernel matmul is a plain (T, C) x (C, C).
    wv = jnp.stack([jnp.transpose(w[:C], (2, 1, 0)) for (w, _) in layers])  # (L, K, C, C)
    wg = jnp.stack([jnp.transpose(w[C:], (2, 1, 0)) for (w, _) in layers])  # (L, K, C, C)
    bv = jnp.stack([b[:C].reshape(1, C) for (_, b) in layers])              # (L, 1, C)
    bg = jnp.stack([b[C:].reshape(1, C) for (_, b) in layers])              # (L, 1, C)

    isz = jnp.dtype(x_btc.dtype).itemsize
    w_bytes = (2 * L * K * C * C + 2 * L * C) * isz
    vmem_est = (2 * T0 * C + 2 * t_final * C) * isz + 2 * w_bytes \
               + 2 * t_pad * C * isz + 4 * t_pad * C * 4
    flops = sum(4 * B * t_sizes[l + 1] * K * C * C for l in range(L))
    trans = sum(B * t_sizes[l + 1] * C for l in range(L))
    cost = pl.CostEstimate(
        flops=int(flops),
        transcendentals=int(trans),
        bytes_accessed=int((B * T0 * C + B * t_final * C) * isz + w_bytes),
    )

    kernel = _make_conv_stack_kernel(tuple(t_sizes), K, stride, padding, L, C)

    return pl.pallas_call(
        kernel,
        grid=(B,),
        out_shape=jax.ShapeDtypeStruct((B, t_final, C), x_btc.dtype),
        in_specs=[
            pl.BlockSpec((1, T0, C), lambda b: (b, 0, 0)),
            pl.BlockSpec((L, K, C, C), lambda b: (0, 0, 0, 0)),
            pl.BlockSpec((L, K, C, C), lambda b: (0, 0, 0, 0)),
            pl.BlockSpec((L, 1, C), lambda b: (0, 0, 0)),
            pl.BlockSpec((L, 1, C), lambda b: (0, 0, 0)),
        ],
        out_specs=pl.BlockSpec((1, t_final, C), lambda b: (b, 0, 0)),
        scratch_shapes=[
            pltpu.VMEM((t_pad, C), x_btc.dtype),
            pltpu.VMEM((t_pad, C), x_btc.dtype),
        ],
        compiler_params=pltpu.CompilerParams(
            dimension_semantics=("parallel",),
            vmem_limit_bytes=_vmem_limit(vmem_est),
        ),
        cost_estimate=cost,
    )(x_btc, wv, wg, bv, bg)


# ------------------------------------------------------------------------------------
# Full ConformerAdapter forward (eval mode)
# ------------------------------------------------------------------------------------
def conformer_adapter_forward(hidden_states, params, *, stride, padding):
    if params["proj_w"] is not None:
        hidden_states = proj_layer_norm(
            hidden_states, params["proj_w"], params["proj_b"],
            params["ln_g"], params["ln_b"],
        )
    if params["layers"]:
        # Conv stack runs channel-last; the module's transpose/transpose-back pair
        # cancels out entirely (no standalone HBM transpose passes).
        hidden_states = adapter_conv_stack(
            hidden_states, params["layers"], stride=stride, padding=padding,
        )
    return hidden_states


# ------------------------------------------------------------------------------------
# Pure-JAX reference (for correctness check)
# ------------------------------------------------------------------------------------
def reference_forward(hidden_states, params, *, stride, padding):
    x = hidden_states
    if params["proj_w"] is not None:
        y = x @ params["proj_w"] + params["proj_b"]
        mean = y.mean(-1, keepdims=True)
        var = ((y - mean) ** 2).mean(-1, keepdims=True)
        x = (y - mean) / jnp.sqrt(var + 1e-5) * params["ln_g"] + params["ln_b"]
    h = jnp.transpose(x, (0, 2, 1))
    for (cw, cb) in params["layers"]:
        out = jax.lax.conv_general_dilated(
            h, cw, window_strides=(stride,), padding=[(padding, padding)],
            dimension_numbers=("NCH", "OIH", "NCH"),
        ) + cb[None, :, None]
        C = out.shape[1] // 2
        h = out[:, :C] * jax.nn.sigmoid(out[:, C:])
    return jnp.transpose(h, (0, 2, 1))


if __name__ == "__main__":
    # Synthetic "config": hidden_size != output_hidden_size so the proj path is exercised.
    hidden_size = 32
    output_hidden_size = 16
    adapter_kernel_size = 3
    adapter_stride = 2
    adapter_padding = 1          # module hard-codes padding=1
    num_adapter_layers = 2

    B, T = 2, 16

    key = jax.random.PRNGKey(0)
    keys = jax.random.split(key, 5 + 2 * num_adapter_layers)

    params = {
        "proj_w": 0.1 * jax.random.normal(keys[0], (hidden_size, output_hidden_size), jnp.float32),
        "proj_b": 0.1 * jax.random.normal(keys[1], (output_hidden_size,), jnp.float32),
        "ln_g": 1.0 + 0.05 * jax.random.normal(keys[2], (output_hidden_size,), jnp.float32),
        "ln_b": 0.05 * jax.random.normal(keys[3], (output_hidden_size,), jnp.float32),
        "layers": [],
    }
    for li in range(num_adapter_layers):
        cw = 0.1 * jax.random.normal(
            keys[4 + 2 * li],
            (2 * output_hidden_size, output_hidden_size, adapter_kernel_size),
            jnp.float32,
        )
        cb = 0.1 * jax.random.normal(keys[5 + 2 * li], (2 * output_hidden_size,), jnp.float32)
        params["layers"].append((cw, cb))

    x = jax.random.normal(keys[4 + 2 * num_adapter_layers], (B, T, hidden_size), jnp.float32)

    out = conformer_adapter_forward(x, params, stride=adapter_stride, padding=adapter_padding)
    out = jax.block_until_ready(out)

    ref = reference_forward(x, params, stride=adapter_stride, padding=adapter_padding)
    assert out.shape == ref.shape, (out.shape, ref.shape)
    assert jnp.allclose(out, ref, atol=1e-4, rtol=1e-4), float(jnp.max(jnp.abs(out - ref)))

    print("KERNEL_OK")
</pallas_src>

<mosaic_0001>
module attributes {stable_mosaic.version = 11 : i64} {
  func.func @_proj_ln_kernel(%arg0: i32, %arg1: memref<32x32xf32, #tpu.memory_space<vmem>>, %arg2: memref<32x16xf32, #tpu.memory_space<vmem>>, %arg3: memref<1x16xf32, #tpu.memory_space<vmem>>, %arg4: memref<1x16xf32, #tpu.memory_space<vmem>>, %arg5: memref<1x16xf32, #tpu.memory_space<vmem>>, %arg6: memref<32x16xf32, #tpu.memory_space<vmem>>) attributes {dimension_semantics = [#tpu.dimension_semantics<parallel>], iteration_bounds = array<i64: 1>, scalar_prefetch = 0 : i64, scratch_operands = 0 : i64, tpu.core_type = #tpu.core_type<tc>, window_params = [{transform_indices = @transform_0, window_bounds = array<i64: 32, 32>}, {pipeline_mode = #tpu.pipeline_mode<synchronous>, transform_indices = @transform_1, window_bounds = array<i64: 32, 16>}, {pipeline_mode = #tpu.pipeline_mode<synchronous>, transform_indices = @transform_2, window_bounds = array<i64: 1, 16>}, {pipeline_mode = #tpu.pipeline_mode<synchronous>, transform_indices = @transform_3, window_bounds = array<i64: 1, 16>}, {pipeline_mode = #tpu.pipeline_mode<synchronous>, transform_indices = @transform_4, window_bounds = array<i64: 1, 16>}, {transform_indices = @transform_5, window_bounds = array<i64: 32, 16>}]} {
    %c0 = arith.constant 0 : index
    %c0_0 = arith.constant 0 : index
    %0 = vector.load %arg1[%c0, %c0_0] : memref<32x32xf32, #tpu.memory_space<vmem>>, vector<32x32xf32>
    %c0_1 = arith.constant 0 : index
    %c0_2 = arith.constant 0 : index
    %1 = vector.load %arg2[%c0_1, %c0_2] : memref<32x16xf32, #tpu.memory_space<vmem>>, vector<32x16xf32>
    %cst = arith.constant dense<0.000000e+00> : vector<32x16xf32>
    %2 = tpu.matmul %0, %1, %cst {dimension_numbers = #tpu.dot_dimension_numbers<[1], [0], [0], [1], [0, 0, 1, 1], [], []>} : vector<32x32xf32>, vector<32x16xf32>, vector<32x16xf32> -> vector<32x16xf32>
    %c0_3 = arith.constant 0 : index
    %c0_4 = arith.constant 0 : index
    %3 = vector.load %arg3[%c0_3, %c0_4] : memref<1x16xf32, #tpu.memory_space<vmem>>, vector<1x16xf32>
    %4 = vector.broadcast %3 : vector<1x16xf32> to vector<32x16xf32>
    %5 = arith.addf %2, %4 : vector<32x16xf32>
    %cst_5 = arith.constant dense<0.000000e+00> : vector<32xf32>
    %6 = vector.multi_reduction <add>, %5, %cst_5 [1] : vector<32x16xf32> to vector<32xf32>
    %7 = vector.shape_cast %6 : vector<32xf32> to vector<32x1xf32>
    %cst_6 = arith.constant 1.600000e+01 : f32
    %8 = vector.broadcast %cst_6 : f32 to vector<32x1xf32>
    %9 = arith.divf %7, %8 : vector<32x1xf32>
    %10 = vector.broadcast %9 : vector<32x1xf32> to vector<32x16xf32>
    %11 = arith.subf %5, %10 : vector<32x16xf32>
    %12 = arith.mulf %11, %11 : vector<32x16xf32>
    %cst_7 = arith.constant dense<0.000000e+00> : vector<32xf32>
    %13 = vector.multi_reduction <add>, %12, %cst_7 [1] : vector<32x16xf32> to vector<32xf32>
    %14 = vector.shape_cast %13 : vector<32xf32> to vector<32x1xf32>
    %cst_8 = arith.constant 1.600000e+01 : f32
    %15 = vector.broadcast %cst_8 : f32 to vector<32x1xf32>
    %16 = arith.divf %14, %15 : vector<32x1xf32>
    %17 = vector.broadcast %9 : vector<32x1xf32> to vector<32x16xf32>
    %18 = arith.subf %5, %17 : vector<32x16xf32>
    %cst_9 = arith.constant 9.99999974E-6 : f32
    %19 = vector.broadcast %cst_9 : f32 to vector<32x1xf32>
    %20 = arith.addf %16, %19 : vector<32x1xf32>
    %21 = math.rsqrt %20 : vector<32x1xf32>
    %22 = vector.broadcast %21 : vector<32x1xf32> to vector<32x16xf32>
    %23 = arith.mulf %18, %22 : vector<32x16xf32>
    %c0_10 = arith.constant 0 : index
    %c0_11 = arith.constant 0 : index
    %24 = vector.load %arg4[%c0_10, %c0_11] : memref<1x16xf32, #tpu.memory_space<vmem>>, vector<1x16xf32>
    %25 = vector.broadcast %24 : vector<1x16xf32> to vector<32x16xf32>
    %26 = arith.mulf %23, %25 : vector<32x16xf32>
    %c0_12 = arith.constant 0 : index
    %c0_13 = arith.constant 0 : index
    %27 = vector.load %arg5[%c0_12, %c0_13] : memref<1x16xf32, #tpu.memory_space<vmem>>, vector<1x16xf32>
    %28 = vector.broadcast %27 : vector<1x16xf32> to vector<32x16xf32>
    %29 = arith.addf %26, %28 : vector<32x16xf32>
    %c0_14 = arith.constant 0 : index
    %c0_15 = arith.constant 0 : index
    %30 = vector.load %arg6[%c0_14, %c0_15] : memref<32x16xf32, #tpu.memory_space<vmem>>, vector<32x16xf32>
    tpu.vector_store %arg6[%c0_14, %c0_15], %29 {strides = array<i32>} : memref<32x16xf32, #tpu.memory_space<vmem>>, vector<32x16xf32>,
    return
  }
  func.func @transform_0(%arg0: i32) -> (i32, i32) {
    %c0_i32 = arith.constant 0 : i32
    %c0_i32_0 = arith.constant 0 : i32
    return %arg0, %c0_i32 : i32, i32
  }
  func.func @transform_1(%arg0: i32) -> (i32, i32) {
    %c0_i32 = arith.constant 0 : i32
    %c0_i32_0 = arith.constant 0 : i32
    %c0_i32_1 = arith.constant 0 : i32
    return %c0_i32, %c0_i32_0 : i32, i32
  }
  func.func @transform_2(%arg0: i32) -> (i32, i32) {
    %c0_i32 = arith.constant 0 : i32
    %c0_i32_0 = arith.constant 0 : i32
    %c0_i32_1 = arith.constant 0 : i32
    return %c0_i32, %c0_i32_0 : i32, i32
  }
  func.func @transform_3(%arg0: i32) -> (i32, i32) {
    %c0_i32 = arith.constant 0 : i32
    %c0_i32_0 = arith.constant 0 : i32
    %c0_i32_1 = arith.constant 0 : i32
    return %c0_i32, %c0_i32_0 : i32, i32
  }
  func.func @transform_4(%arg0: i32) -> (i32, i32) {
    %c0_i32 = arith.constant 0 : i32
    %c0_i32_0 = arith.constant 0 : i32
    %c0_i32_1 = arith.constant 0 : i32
    return %c0_i32, %c0_i32_0 : i32, i32
  }
  func.func @transform_5(%arg0: i32) -> (i32, i32) {
    %c0_i32 = arith.constant 0 : i32
    %c0_i32_0 = arith.constant 0 : i32
    return %arg0, %c0_i32 : i32, i32
  }
}

</mosaic_0001>

<bundles_post_ra>
// kernel: tpu_custom_call.1
= control target key start
LH: loop header
LB: loop body
LE: loop exit
PB: predicated region body
PF: predicated region fallthrough
CT: control target
= control target key end

     0   :  { %vm35_vm0 = vcmask 261120   ;;  %vm133_vm1 = vcmask 130048   ;;  %s357_s1 = inlined_call_operand.vmem [shape: f32[32,16], index: 1, kind: input, shape index: {}]   ;;  %s358_s0 = inlined_call_operand.vmem [shape: f32[32,32], index: 0, kind: input, shape index: {}]   ;;  %s359_s2 = inlined_call_operand.vmem [shape: f32[1,16], index: 2, kind: input, shape index: {}]   ;;  %s360_s3 = inlined_call_operand.vmem [shape: f32[1,16], index: 3, kind: input, shape index: {}]   ;;  %s361_s4 = inlined_call_operand.vmem [shape: f32[1,16], index: 4, kind: input, shape index: {}]   ;;  %s362_s5 = inlined_call_operand.vmem [shape: f32[32,16], index: 5, kind: output, shape index: {}]  }
   0x1   :  { %v24_v0 = vld [vmem:[%s357_s1] sm:$0xff]  ;;  %v25_v1 = vld [vmem:[%s357_s1 + $0x8] sm:$0xff]  ;;  %v26_v2 = vld [vmem:[%s357_s1 + $0x10] sm:$0xff] }
   0x2   :  { %v246_v3 = vpack.c.bf16 %v25_v1, %v24_v0  ;;  %v27_v4 = vld [vmem:[%s357_s1 + $0x18] sm:$0xff]  ;;  %v20_v5 = vld [vmem:[%s358_s0] sm:$0xff]  ;;  %v22_v6 = vld [vmem:[%s358_s0 + $0x10] sm:$0xff] }
   0x3   :  { %v250_v7 = vpack.c.bf16 %v27_v4, %v26_v2  ;;  %240 = vmatprep.mubr.msk.f32.mxu0 %vm35_vm0, %v20_v5  ;;  %243 = vmatprep.mubr.msk.f32.mxu1 %vm35_vm0, %v22_v6  ;;  %v21_v8 = vld [vmem:[%s358_s0 + $0x8] sm:$0xff]  ;;  %v23_v9 = vld [vmem:[%s358_s0 + $0x18] sm:$0xff]  ;;  %v217_v10 = vld [vmem:[%s359_s2] ss:$0 sm:$0xff] }
   0x4   :  { %247 = vmatprep.subr.bf16.mxu0 %v246_v3  ;;  %254 = vmatprep.subr.bf16.mxu1 %v246_v3  ;;  %v222_v56 = vld [vmem:[%s360_s3] ss:$0 sm:$0xff] }
   0x5   :  { %249 = vmatpush3.bf16.msra.mxu0 %v246_v3  ;;  %256 = vmatpush3.bf16.msra.mxu1 %v246_v3  ;;  %v223_v58 = vld [vmem:[%s361_s4] ss:$0 sm:$0xff] }
   0x6   :  { %251 = vmatprep.subr.bf16.mxu0 %v250_v7  ;;  %255 = vmatprep.subr.bf16.mxu1 %v250_v7 }
   0x9   :  { %253 = vmatpush3.bf16.msra.mxu0 %v250_v7  ;;  %257 = vmatpush3.bf16.msra.mxu1 %v250_v7 }
   0xc   :  { %241 = vmatmul.mubr.msk.f32.vlgmr.msra.gmra.mrb[0].mxu0 %vm35_vm0, %v21_v8  ;;  %244 = vmatmul.mubr.msk.f32.vlgmr.msra.gmra.mrb[0].mxu1 %vm35_vm0, %v23_v9 }
  0xdf   :  { %v242_v11 = vpop.f32.mrb[0].mxu0  ;;  %v245_v12 = vpop.f32.mrb[0].mxu1 }
  0xe0   :  { %v114_v13 = vpop.f32.mrb[1].mxu0  ;;  %v124_v14 = vpop.f32.mrb[1].mxu1  ;;  %v130_v15 = vadd.f32 %v245_v12, %v217_v10  ;;  %v120_v18 = vadd.f32 %v242_v11, %v217_v10 }
  0xe1   :  { %v115_v16 = vadd.f32 %v217_v10, %v114_v13  ;;  %v125_v17 = vadd.f32 %v217_v10, %v124_v14 }
  0xe2   :  { %v143_v21 = vsel %vm133_vm1, %v130_v15, 0.0  ;;  %v137_v22 = vsel %vm133_vm1, %v120_v18, 0.0 }
  0xe3   :  { %v140_v19 = vsel %vm133_vm1, %v125_v17, 0.0  ;;  %v134_v20 = vsel %vm133_vm1, %v115_v16, 0.0 }
  0xe4   :  { %141 = vadd.xlane.f32.xlu1 %v140_v19  ;;  %135 = vadd.xlane.f32.xlu0 %v134_v20 }
  0xe8   :  { %144 = vadd.xlane.f32.xlu1 %v143_v21  ;;  %138 = vadd.xlane.f32.xlu0 %v137_v22 }
 0x171   :  { %v142_v23 = vpop.xlane.xlu1 %141  ;;  %v136_v24 = vpop.xlane.xlu0 %135 }
 0x172   :  { %v149_v25 = vmul.f32 0.0625, %v142_v23  ;;  %v147_v26 = vmul.f32 0.0625, %v136_v24 }
 0x174   :  { %v153_v27 = vsub.f32 %v125_v17, %v149_v25  ;;  %v151_v28 = vsub.f32 %v115_v16, %v147_v26 }
 0x175   :  { %v145_v29 = vpop.xlane.xlu1 %144  ;;  %v139_v30 = vpop.xlane.xlu0 %138 }
 0x176   :  { %v150_v31 = vmul.f32 0.0625, %v145_v29  ;;  %v148_v32 = vmul.f32 0.0625, %v139_v30  ;;  %v155_v33 = vmul.f32 %v151_v28, %v151_v28  ;;  %v157_v37 = vmul.f32 %v153_v27, %v153_v27 }
 0x178   :  { %v154_v34 = vsub.f32 %v130_v15, %v150_v31  ;;  %v152_v35 = vsub.f32 %v120_v18, %v148_v32  ;;  %v159_v36 = vsel %vm133_vm1, %v155_v33, 0.0  ;;  %v165_v39 = vsel %vm133_vm1, %v157_v37, 0.0 }
 0x179   :  { %160 = vadd.xlane.f32.xlu0 %v159_v36 }
 0x17a   :  { %v156_v38 = vmul.f32 %v152_v35, %v152_v35  ;;  %v158_v41 = vmul.f32 %v154_v34, %v154_v34 }
 0x17c   :  { %v162_v40 = vsel %vm133_vm1, %v156_v38, 0.0  ;;  %v168_v42 = vsel %vm133_vm1, %v158_v41, 0.0 }
 0x17d   :  { %166 = vadd.xlane.f32.xlu0 %v165_v39  ;;  %163 = vadd.xlane.f32.xlu1 %v162_v40 }
 0x181   :  { %169 = vadd.xlane.f32.xlu1 %v168_v42 }
 0x206   :  { %v161_v43 = vpop.xlane.xlu0 %160 }
 0x207   :  { %v171_v44 = vmul.f32 0.0625, %v161_v43 }
 0x209   :  { %v175_v45 = vadd.f32 1e-05, %v171_v44 }
 0x20a   :  { %v164_v46 = vpop.xlane.xlu1 %163  ;;  %v167_v47 = vpop.xlane.xlu0 %166 }
 0x20b   :  { %258 = vrsqrt.f32 %v175_v45  ;;  %v172_v48 = vmul.f32 0.0625, %v164_v46  ;;  %v173_v49 = vmul.f32 0.0625, %v167_v47 }
 0x20d   :  { %v176_v50 = vadd.f32 1e-05, %v172_v48  ;;  %v177_v51 = vadd.f32 1e-05, %v173_v49 }
 0x20e   :  { %v170_v52 = vpop.xlane.xlu1 %169 }
 0x20f   :  { %260 = vrsqrt.f32 %v176_v50  ;;  %v174_v53 = vmul.f32 0.0625, %v170_v52 }
 0x210   :  { %262 = vrsqrt.f32 %v177_v51 }
 0x211   :  { %v178_v54 = vadd.f32 1e-05, %v174_v53 }
 0x213   :  { %264 = vrsqrt.f32 %v178_v54 }
 0x215   :  { %v259_v55 = vpop.eup %258 }
 0x216   :  { %v183_v57 = vmul.f32 %v259_v55, %v151_v28 }
 0x218   :  { %v194_v59 = vmul.f32 %v222_v56, %v183_v57 }
 0x219   :  { %v261_v60 = vpop.eup %260 }
 0x21a   :  { %v263_v61 = vpop.eup %262  ;;  %v205_v62 = vadd.f32 %v223_v58, %v194_v59  ;;  %v184_v63 = vmul.f32 %v261_v60, %v152_v35 }
 0x21b   :  { %v185_v0 = vmul.f32 %v263_v61, %v153_v27 }
 0x21c   :  { %209 = vst.msk [vmem:[%s362_s5] sm:$0xff] %vm133_vm1, %v205_v62  ;;  %v195_v1 = vmul.f32 %v222_v56, %v184_v63 }
 0x21d   :  { %v265_v2 = vpop.eup %264  ;;  %v196_v3 = vmul.f32 %v222_v56, %v185_v0 }
 0x21e   :  { %v206_v4 = vadd.f32 %v223_v58, %v195_v1  ;;  %v186_v5 = vmul.f32 %v265_v2, %v154_v34 }
 0x21f   :  { %v207_v6 = vadd.f32 %v223_v58, %v196_v3 }
 0x220   :  { %210 = vst.msk [vmem:[%s362_s5 + $0x8] sm:$0xff] %vm133_vm1, %v206_v4  ;;  %v197_v7 = vmul.f32 %v222_v56, %v186_v5 }
 0x221   :  { %211 = vst.msk [vmem:[%s362_s5 + $0x10] sm:$0xff] %vm133_vm1, %v207_v6 }
 0x222   :  { %v208_v8 = vadd.f32 %v223_v58, %v197_v7 }
 0x224   :  { %212 = vst.msk [vmem:[%s362_s5 + $0x18] sm:$0xff] %vm133_vm1, %v208_v8 }

</bundles_post_ra>
